<compile_context>
chip_gen: v7x
topology: tpu7x:2x2x1
jax: 0.10.0
libtpu: 0.0.40
codegen_flags: <defaults>
</compile_context>

<pallas_src>
import functools

import jax
import jax.numpy as jnp
from jax import lax
from jax.experimental import pallas as pl
from jax.experimental.pallas import tpu as pltpu


# ----------------------------------------------------------------------------
# Wrapper-side helper: split an f32 matrix into `terms` stacked bf16 rows so that
# the row-group sum reconstructs the f32 values (one-hot matmuls stay exact-ish).
# ----------------------------------------------------------------------------
def _bf16_terms_stack(a_f32, terms=3):
    parts = []
    residual = a_f32
    for _ in range(terms):
        p = residual.astype(jnp.bfloat16)
        parts.append(p)
        residual = residual - p.astype(jnp.float32)
    return jnp.concatenate(parts, axis=0)          # (terms * R, N) bf16


def _recombine(g, terms):
    """Sum the `terms` stacked row-groups of a (terms*R, T) f32 matmul result."""
    r = g.shape[0] // terms
    out = g[:r]
    for t in range(1, terms):
        out = out + g[t * r:(t + 1) * r]
    return out                                     # (R, T) f32


def _make_onehots(src_ids, trg_ids, n_nodes):
    """bf16 (N, tE) one-hots; compare stays in int32 (v5e-safe), only the final cast."""
    t_e = src_ids.shape[-1]
    node_iota = lax.broadcasted_iota(jnp.int32, (n_nodes, t_e), 0)
    oh_src = (src_ids == node_iota).astype(jnp.bfloat16)
    oh_trg = (trg_ids == node_iota).astype(jnp.bfloat16)
    return oh_src, oh_trg


# ----------------------------------------------------------------------------
# Pass 1: online global max + neighborhood scatter-add (sequential edge tiles).
# ----------------------------------------------------------------------------
def _scatter_kernel(src_ref, trg_ref, ssrc_ref, strg_ref, m_ref, sums_ref,
                    *, n_nodes, num_heads, n_terms, negative_slope):
    @pl.when(pl.program_id(0) == 0)
    def _():
        m_ref[...] = jnp.full_like(m_ref, -jnp.inf)
        sums_ref[...] = jnp.zeros_like(sums_ref)

    src_ids = src_ref[...]                      # (1, tE) int32
    trg_ids = trg_ref[...]                      # (1, tE) int32
    oh_src, oh_trg = _make_onehots(src_ids, trg_ids, n_nodes)

    # One-hot gather of the hoisted per-node scores: (terms*H, N) @ (N, tE).
    g_src = jnp.dot(ssrc_ref[...], oh_src, preferred_element_type=jnp.float32)
    g_trg = jnp.dot(strg_ref[...], oh_trg, preferred_element_type=jnp.float32)
    lifted = _recombine(g_src, n_terms) + _recombine(g_trg, n_terms)   # (H, tE)

    scores = jnp.where(lifted >= 0.0, lifted, negative_slope * lifted)
    # Padded edges (sentinel index == n_nodes) must never win the max / scatter.
    scores = jnp.where(trg_ids < n_nodes, scores, jnp.float32(-1e30))

    tile_max = jnp.max(jnp.max(scores, axis=1, keepdims=True),
                       axis=0, keepdims=True)                # (1, 1)
    m_new = jnp.maximum(m_ref[...], tile_max)                # (1, 1)
    alpha = jnp.exp(m_ref[...] - m_new)                      # 0.0 at step 0
    p = jnp.exp(scores - m_new)                              # (H, tE), in [0, 1]

    # Scatter-add by target node via MXU (contract the edge axis): 2-term bf16 split.
    p_hi = p.astype(jnp.bfloat16)
    p_lo = (p - p_hi.astype(jnp.float32)).astype(jnp.bfloat16)
    dn = (((1,), (1,)), ((), ()))
    delta = (lax.dot_general(p_hi, oh_trg, dn, preferred_element_type=jnp.float32)
             + lax.dot_general(p_lo, oh_trg, dn, preferred_element_type=jnp.float32))
    sums_ref[...] = sums_ref[...] * alpha + delta            # (H, N)
    m_ref[...] = m_new


# ----------------------------------------------------------------------------
# Pass 2: normalize per edge + fused source/target gathers (independent tiles).
# ----------------------------------------------------------------------------
def _normalize_kernel(src_ref, trg_ref, cat_src_ref, cat_trg_ref, m_ref,
                      att_ref, feats_ref,
                      *, n_nodes, num_heads, n_terms, negative_slope):
    h = num_heads
    src_ids = src_ref[...]
    trg_ids = trg_ref[...]
    oh_src, oh_trg = _make_onehots(src_ids, trg_ids, n_nodes)

    # Fused gathers: [s_src ; x^T] via oh_src and [s_trg ; sums] via oh_trg.
    g_src = jnp.dot(cat_src_ref[...], oh_src, preferred_element_type=jnp.float32)
    g_trg = jnp.dot(cat_trg_ref[...], oh_trg, preferred_element_type=jnp.float32)
    src_side = _recombine(g_src, n_terms)       # (H+HF, tE): [scores_src ; feats]
    trg_side = _recombine(g_trg, n_terms)       # (2H,  tE): [scores_trg ; denom]

    lifted = src_side[:h] + trg_side[:h]                         # (H, tE)
    scores = jnp.where(lifted >= 0.0, lifted, negative_slope * lifted)
    scores = jnp.where(trg_ids < n_nodes, scores, jnp.float32(-1e30))

    p = jnp.exp(scores - m_ref[...])                             # (H, tE)
    denom = trg_side[h:]                                         # (H, tE)
    att_ref[...] = p / (denom + 1e-16)
    feats_ref[...] = src_side[h:]                                # (HF, tE), lane-dense


# ----------------------------------------------------------------------------
# Wrapper: layout plumbing + two pallas_calls.
# ----------------------------------------------------------------------------
def attention_weight_sum_forward(data, scoring_fn_target, scoring_fn_source,
                                 *, negative_slope=0.2, edge_tile=1024,
                                 n_terms=3):
    nodes_features, edge_index = data          # (N, H, F), (2, E)
    n, h, f = nodes_features.shape
    hf = h * f
    e = edge_index.shape[1]

    # Edge tile: hardened to a multiple of 128 lanes (keeps output stores lane-dense),
    # no larger than the padded edge count.
    edge_tile = max(128, (int(edge_tile) // 128) * 128)
    t_e = min(edge_tile, pl.cdiv(e, 128) * 128)
    e_pad = pl.cdiv(e, t_e) * t_e

    trg = edge_index[0].astype(jnp.int32)      # target nodes (trg_nodes_dim = 0)
    src = edge_index[1].astype(jnp.int32)      # source nodes (src_nodes_dim = 1)
    src_row = jnp.pad(src, (0, e_pad - e), constant_values=n).reshape(1, e_pad)
    trg_row = jnp.pad(trg, (0, e_pad - e), constant_values=n).reshape(1, e_pad)

    x = nodes_features.astype(jnp.float32)
    a_src = scoring_fn_source.reshape(h, f).astype(jnp.float32)
    a_trg = scoring_fn_target.reshape(h, f).astype(jnp.float32)

    # Hoisted, grid-invariant per-node scores (exact f32 elementwise, like the ref).
    s_src = (x * a_src[None]).sum(-1).T                    # (H, N)
    s_trg = (x * a_trg[None]).sum(-1).T                    # (H, N)
    # Feature-major node tensor: x^T[h*F+f, n] = x[n, h, f]  (nodes on lanes).
    x_t = jnp.transpose(x, (1, 2, 0)).reshape(hf, n)       # (HF, N)

    # bf16 multi-term stacks (exact 0/1 one-hots make the gathers ~f32-accurate).
    ssrc_stk = _bf16_terms_stack(s_src, n_terms)                               # (3H, N)
    strg_stk = _bf16_terms_stack(s_trg, n_terms)                               # (3H, N)
    cat_src = _bf16_terms_stack(jnp.concatenate([s_src, x_t], axis=0), n_terms)  # (3(H+HF), N)

    grid = (e_pad // t_e,)
    edge_specs = [pl.BlockSpec((1, t_e), lambda i: (0, i)),
                  pl.BlockSpec((1, t_e), lambda i: (0, i))]

    def const_spec(shape):
        return pl.BlockSpec(shape, lambda i: (0, 0))

    # --- pass 1: global max + neighborhood denominators --------------------
    m_val, sums = pl.pallas_call(
        functools.partial(_scatter_kernel, n_nodes=n, num_heads=h,
                          n_terms=n_terms, negative_slope=negative_slope),
        out_shape=(jax.ShapeDtypeStruct((1, 1), jnp.float32),
                   jax.ShapeDtypeStruct((h, n), jnp.float32)),
        grid=grid,
        in_specs=edge_specs + [const_spec((n_terms * h, n)),
                               const_spec((n_terms * h, n))],
        out_specs=(pl.BlockSpec((1, 1), lambda i: (0, 0)),
                   pl.BlockSpec((h, n), lambda i: (0, 0))),
        compiler_params=pltpu.CompilerParams(dimension_semantics=("arbitrary",)),
    )(src_row, trg_row, ssrc_stk, strg_stk)

    # Target-side fused operand for pass 2: [s_trg ; neighborhood sums].
    cat_trg = _bf16_terms_stack(jnp.concatenate([s_trg, sums], axis=0), n_terms)  # (3*2H, N)

    # --- pass 2: per-edge attention + fused source-feature gather ----------
    att_t, feats_t = pl.pallas_call(
        functools.partial(_normalize_kernel, n_nodes=n, num_heads=h,
                          n_terms=n_terms, negative_slope=negative_slope),
        out_shape=(jax.ShapeDtypeStruct((h, e_pad), jnp.float32),
                   jax.ShapeDtypeStruct((hf, e_pad), jnp.float32)),
        grid=grid,
        in_specs=edge_specs + [const_spec((n_terms * (h + hf), n)),
                               const_spec((n_terms * 2 * h, n)),
                               const_spec((1, 1))],
        out_specs=(pl.BlockSpec((h, t_e), lambda i: (0, i)),
                   pl.BlockSpec((hf, t_e), lambda i: (0, i))),
        compiler_params=pltpu.CompilerParams(dimension_semantics=("parallel",)),
    )(src_row, trg_row, cat_src, cat_trg, m_val)

    out_dtype = nodes_features.dtype
    attentions_per_edge = att_t[:, :e].T[:, :, None].astype(out_dtype)              # (E, H, 1)
    src_nodes_features_lifted = feats_t[:, :e].T.reshape(e, h, f).astype(out_dtype)  # (E, H, F)
    return attentions_per_edge, src_nodes_features_lifted


# ----------------------------------------------------------------------------
# Plain-JAX reference (mirrors the PyTorch module).
# ----------------------------------------------------------------------------
def attention_weight_sum_ref(data, scoring_fn_target, scoring_fn_source,
                             negative_slope=0.2):
    x, edge_index = data
    x = x.astype(jnp.float32)
    num_nodes, h, _ = x.shape
    s_src = (x * scoring_fn_source).sum(-1)        # (N, H)
    s_trg = (x * scoring_fn_target).sum(-1)        # (N, H)
    trg = edge_index[0]
    src = edge_index[1]
    scores = s_src[src] + s_trg[trg]               # (E, H)
    feats = x[src]                                 # (E, H, F)
    scores = jnp.where(scores >= 0, scores, negative_slope * scores)
    scores = scores - jnp.max(scores)
    exp_scores = jnp.exp(scores)
    denom_nodes = jnp.zeros((num_nodes, h), jnp.float32).at[trg].add(exp_scores)
    denom = denom_nodes[trg]
    att = (exp_scores / (denom + 1e-16))[:, :, None]
    return att, feats


if __name__ == "__main__":
    key = jax.random.PRNGKey(0)
    k_x, k_e, k_t, k_s = jax.random.split(key, 4)

    num_nodes, num_heads, num_feat = 64, 4, 8
    num_edges = 333   # deliberately not a multiple of the edge tile (ragged path)

    x = jax.random.normal(k_x, (num_nodes, num_heads, num_feat), jnp.float32)
    edge_index = jax.random.randint(k_e, (2, num_edges), 0, num_nodes, dtype=jnp.int32)
    bound = (6.0 / (num_feat + 1)) ** 0.5
    scoring_fn_target = jax.random.uniform(
        k_t, (1, num_heads, num_feat), jnp.float32, -bound, bound)
    scoring_fn_source = jax.random.uniform(
        k_s, (1, num_heads, num_feat), jnp.float32, -bound, bound)

    att, feats = attention_weight_sum_forward(
        (x, edge_index), scoring_fn_target, scoring_fn_source, edge_tile=128)
    jax.block_until_ready(att)
    jax.block_until_ready(feats)

    att_ref, feats_ref = attention_weight_sum_ref(
        (x, edge_index), scoring_fn_target, scoring_fn_source)

    assert att.shape == (num_edges, num_heads, 1)
    assert feats.shape == (num_edges, num_heads, num_feat)
    assert jnp.allclose(att, att_ref, atol=2e-4, rtol=2e-4), \
        float(jnp.max(jnp.abs(att - att_ref)))
    assert jnp.allclose(feats, feats_ref, atol=2e-4, rtol=2e-4), \
        float(jnp.max(jnp.abs(feats - feats_ref)))

    print("KERNEL_OK")
</pallas_src>

<mosaic_0001>
module attributes {stable_mosaic.version = 11 : i64} {
  func.func @_scatter_kernel(%arg0: i32, %arg1: memref<1x128xi32, #tpu.memory_space<vmem>>, %arg2: memref<1x128xi32, #tpu.memory_space<vmem>>, %arg3: memref<12x64xbf16, #tpu.memory_space<vmem>>, %arg4: memref<12x64xbf16, #tpu.memory_space<vmem>>, %arg5: memref<1x1xf32, #tpu.memory_space<vmem>>, %arg6: memref<4x64xf32, #tpu.memory_space<vmem>>) attributes {dimension_semantics = [#tpu.dimension_semantics<arbitrary>], iteration_bounds = array<i64: 3>, scalar_prefetch = 0 : i64, scratch_operands = 0 : i64, tpu.core_type = #tpu.core_type<tc>, window_params = [{transform_indices = @transform_0, window_bounds = array<i64: 1, 128>}, {transform_indices = @transform_1, window_bounds = array<i64: 1, 128>}, {pipeline_mode = #tpu.pipeline_mode<synchronous>, transform_indices = @transform_2, window_bounds = array<i64: 12, 64>}, {pipeline_mode = #tpu.pipeline_mode<synchronous>, transform_indices = @transform_3, window_bounds = array<i64: 12, 64>}, {pipeline_mode = #tpu.pipeline_mode<synchronous>, transform_indices = @transform_4, window_bounds = array<i64: 1, 1>}, {pipeline_mode = #tpu.pipeline_mode<synchronous>, transform_indices = @transform_5, window_bounds = array<i64: 4, 64>}]} {
    %c0_i32 = arith.constant 0 : i32
    %0 = arith.cmpi eq, %arg0, %c0_i32 : i32
    %1 = arith.extui %0 : i1 to i32
    %c0_i32_0 = arith.constant 0 : i32
    %2 = arith.cmpi ne, %1, %c0_i32_0 : i32
    scf.if %2 {
      %cst_26 = arith.constant 0xFF800000 : f32
      %67 = vector.broadcast %cst_26 : f32 to vector<1x1xf32>
      %c0_27 = arith.constant 0 : index
      %c0_28 = arith.constant 0 : index
      %68 = vector.load %arg5[%c0_27, %c0_28] : memref<1x1xf32, #tpu.memory_space<vmem>>, vector<1x1xf32>
      tpu.vector_store %arg5[%c0_27, %c0_28], %67 {strides = array<i32>} : memref<1x1xf32, #tpu.memory_space<vmem>>, vector<1x1xf32>,
      %cst_29 = arith.constant 0.000000e+00 : f32
      %69 = vector.broadcast %cst_29 : f32 to vector<4x64xf32>
      %c0_30 = arith.constant 0 : index
      %c0_31 = arith.constant 0 : index
      %70 = vector.load %arg6[%c0_30, %c0_31] : memref<4x64xf32, #tpu.memory_space<vmem>>, vector<4x64xf32>
      tpu.vector_store %arg6[%c0_30, %c0_31], %69 {strides = array<i32>} : memref<4x64xf32, #tpu.memory_space<vmem>>, vector<4x64xf32>,
    } else {
    }
    %c0 = arith.constant 0 : index
    %c0_1 = arith.constant 0 : index
    %3 = vector.load %arg1[%c0, %c0_1] : memref<1x128xi32, #tpu.memory_space<vmem>>, vector<1x128xi32>
    %c0_2 = arith.constant 0 : index
    %c0_3 = arith.constant 0 : index
    %4 = vector.load %arg2[%c0_2, %c0_3] : memref<1x128xi32, #tpu.memory_space<vmem>>, vector<1x128xi32>
    %5 = tpu.iota {dimensions = array<i32: 0>} : vector<64x128xi32>
    %6 = vector.broadcast %3 : vector<1x128xi32> to vector<64x128xi32>
    %7 = arith.cmpi eq, %6, %5 : vector<64x128xi32>
    %8 = arith.extui %7 : vector<64x128xi1> to vector<64x128xi32>
    %9 = arith.sitofp %8 : vector<64x128xi32> to vector<64x128xf32>
    %10 = arith.truncf %9 : vector<64x128xf32> to vector<64x128xbf16>
    %11 = vector.broadcast %4 : vector<1x128xi32> to vector<64x128xi32>
    %12 = arith.cmpi eq, %11, %5 : vector<64x128xi32>
    %13 = arith.extui %12 : vector<64x128xi1> to vector<64x128xi32>
    %14 = arith.sitofp %13 : vector<64x128xi32> to vector<64x128xf32>
    %15 = arith.truncf %14 : vector<64x128xf32> to vector<64x128xbf16>
    %c0_4 = arith.constant 0 : index
    %c0_5 = arith.constant 0 : index
    %16 = vector.load %arg3[%c0_4, %c0_5] : memref<12x64xbf16, #tpu.memory_space<vmem>>, vector<12x64xbf16>
    %cst = arith.constant dense<0.000000e+00> : vector<12x128xf32>
    %17 = tpu.matmul %16, %10, %cst {dimension_numbers = #tpu.dot_dimension_numbers<[1], [0], [0], [1], [0, 0, 1, 1], [], []>} : vector<12x64xbf16>, vector<64x128xbf16>, vector<12x128xf32> -> vector<12x128xf32>
    %c0_6 = arith.constant 0 : index
    %c0_7 = arith.constant 0 : index
    %18 = vector.load %arg4[%c0_6, %c0_7] : memref<12x64xbf16, #tpu.memory_space<vmem>>, vector<12x64xbf16>
    %cst_8 = arith.constant dense<0.000000e+00> : vector<12x128xf32>
    %19 = tpu.matmul %18, %15, %cst_8 {dimension_numbers = #tpu.dot_dimension_numbers<[1], [0], [0], [1], [0, 0, 1, 1], [], []>} : vector<12x64xbf16>, vector<64x128xbf16>, vector<12x128xf32> -> vector<12x128xf32>
    %20 = vector.extract_strided_slice %17 {offsets = [0, 0], sizes = [4, 128], strides = [1, 1]} : vector<12x128xf32> to vector<4x128xf32>
    %21 = vector.extract_strided_slice %17 {offsets = [4, 0], sizes = [4, 128], strides = [1, 1]} : vector<12x128xf32> to vector<4x128xf32>
    %22 = arith.addf %20, %21 : vector<4x128xf32>
    %23 = vector.extract_strided_slice %17 {offsets = [8, 0], sizes = [4, 128], strides = [1, 1]} : vector<12x128xf32> to vector<4x128xf32>
    %24 = arith.addf %22, %23 : vector<4x128xf32>
    %25 = vector.extract_strided_slice %19 {offsets = [0, 0], sizes = [4, 128], strides = [1, 1]} : vector<12x128xf32> to vector<4x128xf32>
    %26 = vector.extract_strided_slice %19 {offsets = [4, 0], sizes = [4, 128], strides = [1, 1]} : vector<12x128xf32> to vector<4x128xf32>
    %27 = arith.addf %25, %26 : vector<4x128xf32>
    %28 = vector.extract_strided_slice %19 {offsets = [8, 0], sizes = [4, 128], strides = [1, 1]} : vector<12x128xf32> to vector<4x128xf32>
    %29 = arith.addf %27, %28 : vector<4x128xf32>
    %30 = arith.addf %24, %29 : vector<4x128xf32>
    %cst_9 = arith.constant 0.000000e+00 : f32
    %31 = vector.broadcast %cst_9 : f32 to vector<4x128xf32>
    %32 = arith.cmpf oge, %30, %31 : vector<4x128xf32>
    %cst_10 = arith.constant 2.000000e-01 : f32
    %33 = vector.broadcast %cst_10 : f32 to vector<4x128xf32>
    %34 = arith.mulf %33, %30 : vector<4x128xf32>
    %35 = arith.select %32, %30, %34 : vector<4x128xi1>, vector<4x128xf32>
    %c64_i32 = arith.constant 64 : i32
    %36 = vector.broadcast %c64_i32 : i32 to vector<1x128xi32>
    %37 = arith.cmpi slt, %4, %36 : vector<1x128xi32>
    %cst_11 = arith.constant -1.000000e+30 : f32
    %38 = vector.shape_cast %37 : vector<1x128xi1> to vector<1x128xi1>
    %39 = vector.broadcast %38 : vector<1x128xi1> to vector<4x128xi1>
    %40 = vector.broadcast %cst_11 : f32 to vector<4x128xf32>
    %41 = arith.select %39, %35, %40 : vector<4x128xi1>, vector<4x128xf32>
    %cst_12 = arith.constant dense<0xFF800000> : vector<4xf32>
    %42 = vector.multi_reduction <maximumf>, %41, %cst_12 [1] : vector<4x128xf32> to vector<4xf32>
    %43 = vector.shape_cast %42 : vector<4xf32> to vector<4x1xf32>
    %cst_13 = arith.constant dense<0xFF800000> : vector<1xf32>
    %44 = vector.multi_reduction <maximumf>, %43, %cst_13 [0] : vector<4x1xf32> to vector<1xf32>
    %45 = vector.shape_cast %44 : vector<1xf32> to vector<1x1xf32>
    %c0_14 = arith.constant 0 : index
    %c0_15 = arith.constant 0 : index
    %46 = vector.load %arg5[%c0_14, %c0_15] : memref<1x1xf32, #tpu.memory_space<vmem>>, vector<1x1xf32>
    %47 = arith.maximumf %46, %45 : vector<1x1xf32>
    %c0_16 = arith.constant 0 : index
    %c0_17 = arith.constant 0 : index
    %48 = vector.load %arg5[%c0_16, %c0_17] : memref<1x1xf32, #tpu.memory_space<vmem>>, vector<1x1xf32>
    %49 = arith.subf %48, %47 : vector<1x1xf32>
    %50 = math.exp %49 : vector<1x1xf32>
    %51 = vector.broadcast %47 : vector<1x1xf32> to vector<4x128xf32>
    %52 = arith.subf %41, %51 : vector<4x128xf32>
    %53 = math.exp %52 : vector<4x128xf32>
    %54 = arith.truncf %53 : vector<4x128xf32> to vector<4x128xbf16>
    %55 = arith.extf %54 : vector<4x128xbf16> to vector<4x128xf32>
    %56 = arith.subf %53, %55 : vector<4x128xf32>
    %57 = arith.truncf %56 : vector<4x128xf32> to vector<4x128xbf16>
    %cst_18 = arith.constant dense<0.000000e+00> : vector<4x64xf32>
    %58 = tpu.matmul %54, %15, %cst_18 {dimension_numbers = #tpu.dot_dimension_numbers<[1], [1], [0], [0], [0, 0, 1, 0], [], []>} : vector<4x128xbf16>, vector<64x128xbf16>, vector<4x64xf32> -> vector<4x64xf32>
    %cst_19 = arith.constant dense<0.000000e+00> : vector<4x64xf32>
    %59 = tpu.matmul %57, %15, %cst_19 {dimension_numbers = #tpu.dot_dimension_numbers<[1], [1], [0], [0], [0, 0, 1, 0], [], []>} : vector<4x128xbf16>, vector<64x128xbf16>, vector<4x64xf32> -> vector<4x64xf32>
    %60 = arith.addf %58, %59 : vector<4x64xf32>
    %c0_20 = arith.constant 0 : index
    %c0_21 = arith.constant 0 : index
    %61 = vector.load %arg6[%c0_20, %c0_21] : memref<4x64xf32, #tpu.memory_space<vmem>>, vector<4x64xf32>
    %62 = vector.broadcast %50 : vector<1x1xf32> to vector<4x64xf32>
    %63 = arith.mulf %61, %62 : vector<4x64xf32>
    %64 = arith.addf %63, %60 : vector<4x64xf32>
    %c0_22 = arith.constant 0 : index
    %c0_23 = arith.constant 0 : index
    %65 = vector.load %arg6[%c0_22, %c0_23] : memref<4x64xf32, #tpu.memory_space<vmem>>, vector<4x64xf32>
    tpu.vector_store %arg6[%c0_22, %c0_23], %64 {strides = array<i32>} : memref<4x64xf32, #tpu.memory_space<vmem>>, vector<4x64xf32>,
    %c0_24 = arith.constant 0 : index
    %c0_25 = arith.constant 0 : index
    %66 = vector.load %arg5[%c0_24, %c0_25] : memref<1x1xf32, #tpu.memory_space<vmem>>, vector<1x1xf32>
    tpu.vector_store %arg5[%c0_24, %c0_25], %47 {strides = array<i32>} : memref<1x1xf32, #tpu.memory_space<vmem>>, vector<1x1xf32>,
    return
  }
  func.func @transform_0(%arg0: i32) -> (i32, i32) {
    %c0_i32 = arith.constant 0 : i32
    %c0_i32_0 = arith.constant 0 : i32
    return %c0_i32, %arg0 : i32, i32
  }
  func.func @transform_1(%arg0: i32) -> (i32, i32) {
    %c0_i32 = arith.constant 0 : i32
    %c0_i32_0 = arith.constant 0 : i32
    return %c0_i32, %arg0 : i32, i32
  }
  func.func @transform_2(%arg0: i32) -> (i32, i32) {
    %c0_i32 = arith.constant 0 : i32
    %c0_i32_0 = arith.constant 0 : i32
    %c0_i32_1 = arith.constant 0 : i32
    return %c0_i32, %c0_i32_0 : i32, i32
  }
  func.func @transform_3(%arg0: i32) -> (i32, i32) {
    %c0_i32 = arith.constant 0 : i32
    %c0_i32_0 = arith.constant 0 : i32
    %c0_i32_1 = arith.constant 0 : i32
    return %c0_i32, %c0_i32_0 : i32, i32
  }
  func.func @transform_4(%arg0: i32) -> (i32, i32) {
    %c0_i32 = arith.constant 0 : i32
    %c0_i32_0 = arith.constant 0 : i32
    %c0_i32_1 = arith.constant 0 : i32
    return %c0_i32, %c0_i32_0 : i32, i32
  }
  func.func @transform_5(%arg0: i32) -> (i32, i32) {
    %c0_i32 = arith.constant 0 : i32
    %c0_i32_0 = arith.constant 0 : i32
    %c0_i32_1 = arith.constant 0 : i32
    return %c0_i32, %c0_i32_0 : i32, i32
  }
}

</mosaic_0001>

<bundles_post_ra>
// kernel: tpu_custom_call.1
= control target key start
LH: loop header
LB: loop body
LE: loop exit
PB: predicated region body
PF: predicated region fallthrough
CT: control target
= control target key end

     0   :  { %11 = vsyncpa [#allocation3], 0  ;;  %s1364_s0 = inlined_call_operand.hbm [shape: s32[1,384], index: 0, kind: input, shape index: {}]   ;;  %s1365_s1 = inlined_call_operand.vmem [shape: s32[1,384], index: 1, kind: input, shape index: {}]   ;;  %s1366_s2 = inlined_call_operand.hbm [shape: bf16[12,64], index: 2, kind: input, shape index: {}]   ;;  %s1367_s3 = inlined_call_operand.vmem [shape: bf16[12,64], index: 3, kind: input, shape index: {}]   ;;  %s1368_s4 = inlined_call_operand.hbm [shape: f32[1,1], index: 4, kind: output, shape index: {0}]   ;;  %s1369_s5 = inlined_call_operand.hbm [shape: f32[4,64], index: 5, kind: output, shape index: {1}]  }
   0x1   :  { %13 = vsyncpa [#allocation3 + $0x1], 0 }
   0x2   :  { %14 = vsyncpa [#allocation6], 0 }
   0x3   :  { %15 = vsyncpa [#allocation4], 0 }
   0x4   :  { %16 = vsyncpa [#allocation9], 0  ;;  %s1100_s18 = smov 0   ;;  %s1102_s19 = smov 0  }
   0x5   :  { %s1104_s20 = smov 0   ;;  %s1106_s21 = smov 0  }
   0x6 LB: > { %s1119_s22 = sadd.s32 4294967295, %s1056_s21   ;;  %p42_p0 = scmp.ne.s32.totalorder %s1048_s19, %s1044_s18  ;;  %s1056_s21 = sphi %s1106_s21, %s1394_s21   ;;  %s1052_s20 = sphi %s1104_s20, %s1393_s20   ;;  %s1048_s19 = sphi %s1102_s19, %s1392_s19   ;;  %s1044_s18 = sphi %s1100_s18, %s1391_s18  }
   0x7   : > { %p1370_p1 = scmp.eq.s32.totalorder %s1119_s22, 0  ;;  %p686_p2 = scmp.ge.s32.totalorder %s1056_s21, 1 }
   0x8   : > { %p163_p3 = scmp.lt.s32.totalorder %s1056_s21, 4  ;;  %s1058_s25 = smov [#allocation5]  }
   0x9   : > { %p1128_p5 = por %p1370_p1, %p42_p0  ;;  %s175_s26 = sshll.u32 %s1058_s25, 4  ;;  %s176_s26 = int_to_ptr.vmem [resolvable:$true] %s175_s26 }
   0xa   : > { %p1132_p6 = pnand %p686_p2, %p163_p3  ;;  %s1145_s28 = sadd.s32 1, %s1056_s21  }
   0xb   : > { %s1373_s23 = scalar_select %p1128_p5, 1, 0 }
   0xc   : > { %s1374_s24 = scalar_select %p1132_p6, 1, 0 }
   0xd   : > { %p834_p7 = pneg %p1132_p6  ;;  %s29_s29 = sadd.s32 1, %s1052_s20 }
   0xe   : > { %s26_s30 = ssub.s32 %s1056_s21, %s1145_s28  ;;  %s900_s8 = scalar_lea.hbm %s1366_s2, 128 }
   0xf   : > { %p1140_p8 = pnand %p834_p7, %p1370_p1  ;;  %p901_p9 = scmp.ne.s32.totalorder %s1366_s2, %s900_s8 }
  0x10   : > { %p907_p13 = scmp.lt.u32.totalorder %s900_s8, %s1366_s2 }
  0x11   : > { %p902_p10 = pneg %p1140_p8 }
  0x13   : > { %p903_p11 = pnand %p902_p10, %p901_p9 }
  0x15   : > { %p904_p12 = pneg %p903_p11 }
  0x17   : > { %p909_p0 = pnand %p907_p13, %p904_p12 }
  0x19   : > { %912 = shalt.err (!%p909_p0)
}
  0x1a   : > { %s913_s13 = scalar_lea.vmem %s176_s26, 128  ;;  %p921_p4 = scmp.lt.s32.totalorder %s176_s26, %s176_s26 }
  0x1b   : > { %p914_p2 = scmp.ne.s32.totalorder %s176_s26, %s913_s13  ;;  %p922_p1 = scmp.lt.s32.totalorder %s913_s13, %s913_s13 }
  0x1d   : > { %p916_p3 = pnand %p914_p2, %p902_p10  ;;  %p923_p5 = por %p922_p1, %p921_p4 }
  0x1f   : > { %p917_p7 = pneg %p916_p3 }
  0x21   : > { %p924_p6 = pnand %p923_p5, %p917_p7 }
  0x23   : > { %927 = shalt.err (!%p924_p6)
}
  0x24   : > { %s1059_s14 = smov 64   ;;  %s1060_s15 = smov 4  }
  0x25   : > { %837 = dma.hbm_to_vmem [thread:$0]  (!%p1140_p8), %s1366_s2, 128, %s176_s26, [#allocation6], %s1059_s14, %s1059_s14, %s1060_s15  }
  0x26   : > { %p27_p9 = scmp.eq.s32.totalorder %s26_s30, 0  ;;  %p36_p10 = scmp.ne.s32.totalorder %s1052_s20, %s1048_s19 }
  0x27   : > { %p37_p1 = scmp.eq.s32.totalorder %s1056_s21, 0  ;;  %p843_p4 = scmp.lt.s32.totalorder %s1056_s21, 3 }
  0x28   : > { %s1171_s18 = scalar_select %p27_p9, %s1052_s20, %s29_s29  }
  0x29   : > { %p38_p5 = por %p37_p1, %p36_p10  ;;  %s192_s25 = sand.u32 1, %s1052_s20  }
  0x2a   : > { %s689_s6 = sshll.u32 %s1056_s21, 4  ;;  %s195_s7 = scalar_lea.vmem [#allocation2], %s192_s25 }
  0x2b   : > { %s202_s8 = sshll.u32 %s195_s7, 4  ;;  %s1178_s11 = scalar_lea.hbm %s1364_s0, %s689_s6  ;;  %s1180_s8 = int_to_ptr.vmem [resolvable:$true] %s202_s8 }
  0x2c   : > { %p1182_p6 = pnand %p843_p4, %p38_p5  ;;  %s193_s21 = scalar_lea.sflag [#allocation3], %s192_s25 }
  0x2d   : > { %s928_s27 = scalar_lea.hbm %s1178_s11, 16  ;;  %s933_s12 = scalar_lea.hbm %s1364_s0, 48 }
  0x2e   : > { %p929_p8 = scmp.ne.s32.totalorder %s1178_s11, %s928_s27  ;;  %p930_p11 = pneg %p1182_p6 }
  0x2f   : > { %p934_p0 = scmp.lt.u32.totalorder %s1178_s11, %s1364_s0  ;;  %p935_p2 = scmp.lt.u32.totalorder %s933_s12, %s928_s27 }
  0x30   : > { %p931_p12 = pnand %p930_p11, %p929_p8  ;;  %p937_p7 = scmp.lt.u32.totalorder %s928_s27, %s1178_s11 }
  0x31   : > { %p936_p3 = por %p935_p2, %p934_p0 }
  0x32   : > { %p932_p13 = pneg %p931_p12 }
  0x33   : > { %p938_p9 = por %p937_p7, %p936_p3 }
  0x35   : > { %p939_p10 = pnand %p938_p9, %p932_p13 }
  0x37   : > { %942 = shalt.err (!%p939_p10)
}
  0x38   : > { %s943_s15 = scalar_lea.vmem %s1180_s8, 16  ;;  %s1061_s16 = smov [#allocation2]  }
  0x39   : > { %p944_p1 = scmp.ne.s32.totalorder %s1180_s8, %s943_s15  ;;  %s948_s17 = sshll.u32 %s1061_s16, 4  ;;  %s949_s17 = int_to_ptr.vmem [resolvable:$false] %s948_s17 }
  0x3a   : > { %s950_s25 = scalar_lea.vmem %s949_s17, 32  ;;  %p951_p8 = scmp.lt.s32.totalorder %s1180_s8, %s949_s17 }
  0x3b   : > { %p946_p4 = pnand %p944_p1, %p930_p11  ;;  %p952_p12 = scmp.lt.s32.totalorder %s950_s25, %s943_s15 }
  0x3d   : > { %p947_p5 = pneg %p946_p4  ;;  %p953_p0 = por %p952_p12, %p951_p8 }
  0x3f   : > { %p954_p2 = pnand %p953_p0, %p947_p5 }
  0x41   : > { %957 = shalt.err (!%p954_p2)
}
  0x42   : > { %841 = dma.hbm_to_vmem [thread:$0]  (!%p1182_p6), %s1178_s11, 16, %s1180_s8, %s193_s21  }
  0x43   : > { %p1377_p13 = scmp.ne.s32.totalorder %s1374_s24, 0 }
  0x44   : > { %s219_s6 = sand.u32 (!%p1377_p13), 1, %s1048_s19   ;;  %p1378_p11 = scmp.ne.s32.totalorder (!%p1377_p13), %s1373_s23, 0 }
  0x45   : > { %217 = sbr.rel (%p1377_p13) target bundleno = 883 (0x373), region = 36  ;;  %s220_s7 = scalar_lea.sflag (!%p1377_p13), [#allocation3], %s219_s6 }
  0x46   : > { %s222_s9 = scalar_lea.vmem (!%p1377_p13), [#allocation2], %s219_s6 }
  0x4c   : > { %1027 = dma.done.wait (%p1378_p11), %s220_s7, 16  }
  0x4d   : > { %1029 = vsyncadd (%p1378_p11), %s220_s7, 4294967280  ;;  %p1379_p3 = scmp.eq.s32.totalorder %s1119_s22, 0 }
  0x4f   : > { %1031 = dma.done.wait (%p1379_p3), [#allocation6], 128   ;;  %p1380_p7 = pmov %p1379_p3 }
  0x50   : > { %p250_p6 = scmp.lt.s32.totalorder %s1119_s22, 2  ;;  %p1381_p9 = scmp.ne.s32.totalorder %s1119_s22, 0 }
  0x51   : > { %1033 = vsyncadd (%p1380_p7), [#allocation6], 4294967168  ;;  %vm258_vm0 = vcmask (!%p1381_p9), 0   ;;  %vm260_vm1 = vcmask (!%p1381_p9), 519168   ;;  %v1062_v0 = vmov (!%p1381_p9), -inf   ;;  %v1063_v1 = vmov (!%p1381_p9), 0.0  }
  0x52   : > { %s251_s24 = scalar_select %p250_p6, %s1119_s22, 2 }
  0x53   : > { %257 = sbr.rel (%p1381_p9) target bundleno = 90 (0x5a), region = 48  ;;  %259 = vst.msk [vmem:[#allocation7] sm:$0x1] (!%p1381_p9), %vm258_vm0, %v1062_v0 }
  0x54   : > { %s252_s11 = scalar_lea.vmem %s1365_s1, %s251_s24  ;;  %261 = vst.msk [vmem:[#allocation8] sm:$0xf] (!%p1381_p9), %vm260_vm1, %v1063_v1 }
  0x5a PF: > { %v264_v2 = vlaneseq  ;;  %v1064_v3 = vmov 0.0   ;;  %v693_v4 = vld [vmem:[%s222_s9] ss:$0 sm:$0xff]  ;;  %vm1065_vm2 = vmmov 0   ;;  %v1066_v14 = vmov 1.0|1.0  }
  0x5b   : > { %772 = vmatprep.subr.bf16.mxu0 %v1064_v3  ;;  %784 = vmatprep.subr.bf16.mxu1 %v1064_v3  ;;  %v1235_v6 = vld [vmem:[%s252_s11] sm:$0x1]  ;;  %v894_v21 = vld [vmem:[#allocation5] sm:$0x3f]   ;;  %v1067_v23 = vmov 0   ;;  %p845_p10 = scmp.eq.s32.totalorder %s1119_s22, 2 }
  0x5c   : > { %v265_v5 = vshrl.u32 %v264_v2, 7  ;;  %780 = vmatprep.mubr.msk.bf16.mxu0 %vm1065_vm2, %v1064_v3  ;;  %792 = vmatprep.mubr.msk.bf16.mxu1 %vm1065_vm2, %v1064_v3  ;;  %v895_v22 = vld [vmem:[%s1367_s3] sm:$0x3f]   ;;  %v473_v52 = vld [vmem:[#allocation7] sm:$0x1]  ;;  %s1068_s21 = smov [#allocation7]  }
  0x5d   : > { %892 = vset.pattern.permute.xlu0 %v1067_v23  ;;  %893 = vset.pattern.permute.xlu1 %v1067_v23  ;;  %s597_s27 = sshll.u32 %s1068_s21, 4  ;;  %s598_s27 = int_to_ptr.vmem [resolvable:$true] %s597_s27 }
  0x5e   : > { %v266_v7 = vadd.s32 8, %v265_v5  ;;  %vm277_vm3 = vcmp.eq.s32.totalorder %v693_v4, %v265_v5  ;;  %v1237_v8 = vsub.s32 0, %v265_v5  ;;  %v267_v9 = vadd.s32 16, %v265_v5  ;;  %s958_s29 = scalar_lea.vmem %s598_s27, 16  ;;  %s964_s30 = scalar_lea.vmem %s598_s27, 32 }
  0x5f   : > { %v268_v10 = vadd.s32 24, %v265_v5  ;;  %v269_v11 = vadd.s32 32, %v265_v5  ;;  %v270_v13 = vadd.s32 40, %v265_v5  ;;  %v271_v16 = vadd.s32 48, %v265_v5  ;;  %p959_p1 = scmp.ne.s32.totalorder %s598_s27, %s958_s29  ;;  %p965_p8 = scmp.lt.s32.totalorder %s598_s27, %s598_s27 }
  0x60   : > { %vm278_vm4 = vcmp.eq.s32.totalorder %v693_v4, %v266_v7  ;;  %v308_v12 = vrot.slane %v1235_v6, %v1237_v8  ;;  %vm279_vm5 = vcmp.eq.s32.totalorder %v693_v4, %v267_v9  ;;  %v272_v17 = vadd.s32 56, %v265_v5  ;;  %p966_p12 = scmp.lt.s32.totalorder %s964_s30, %s958_s29 }
  0x61   : > { %vm711_vm6 = vmpackc.low %vm278_vm4, %vm277_vm3  ;;  %vm280_vm7 = vcmp.eq.s32.totalorder %v693_v4, %v268_v10  ;;  %vm281_vm14 = vcmp.eq.s32.totalorder %v693_v4, %v269_v11  ;;  %vm282_vm15 = vcmp.eq.s32.totalorder %v693_v4, %v270_v13  ;;  %p960_p4 = pnand %p959_p1, %p845_p10 }
  0x62   : > { %773 = vmatpush3.bf16.msk.msra.mxu0 %vm711_vm6, %v1066_v14  ;;  %vm309_vm8 = vcmp.eq.s32.totalorder %v308_v12, %v265_v5  ;;  %vm310_vm9 = vcmp.eq.s32.totalorder %v308_v12, %v266_v7  ;;  %vm713_vm10 = vmpackc.low %vm280_vm7, %vm279_vm5  ;;  %vm311_vm11 = vcmp.eq.s32.totalorder %v308_v12, %v267_v9  ;;  %vm312_vm12 = vcmp.eq.s32.totalorder %v308_v12, %v268_v10  ;;  %p967_p0 = por %p966_p12, %p965_p8 }
  0x63   : > { %vm1241_vm13 = vmpackc.low %vm310_vm9, %vm309_vm8  ;;  %774 = vmatprep.subr.bf16.mxu0 %v1064_v3  ;;  %vm313_vm1 = vcmp.eq.s32.totalorder %v308_v12, %v269_v11  ;;  %vm314_vm3 = vcmp.eq.s32.totalorder %v308_v12, %v270_v13  ;;  %vm283_vm5 = vcmp.eq.s32.totalorder %v693_v4, %v271_v16  ;;  %vm284_vm6 = vcmp.eq.s32.totalorder %v693_v4, %v272_v17  ;;  %p961_p5 = pneg %p960_p4 }
  0x64   : > { %785 = vmatpush3.bf16.msk.msra.mxu1 %vm1241_vm13, %v1066_v14  ;;  %vm1249_vm0 = vmpackc.low %vm312_vm12, %vm311_vm11  ;;  %vm315_vm8 = vcmp.eq.s32.totalorder %v308_v12, %v271_v16  ;;  %vm316_vm9 = vcmp.eq.s32.totalorder %v308_v12, %v272_v17  ;;  %vm344_vm12 = vcmask 523264  }
  0x65   : > { %786 = vmatprep.subr.bf16.mxu1 %v1064_v3  ;;  %vm715_vm4 = vmpackc.low %vm282_vm15, %vm281_vm14  ;;  %vm462_vm15 = vcmask 1043456   ;;  %p968_p2 = pnand %p967_p0, %p961_p5 }
  0x66   : > { %775 = vmatpush3.bf16.msk.msra.mxu0 %vm713_vm10, %v1066_v14  ;;  %vm1257_vm7 = vmpackc.low %vm314_vm3, %vm313_vm1 }
  0x67   : > { %776 = vmatprep.subr.bf16.mxu0 %v1064_v3  ;;  %vm717_vm10 = vmpackc.low %vm284_vm6, %vm283_vm5 }
  0x68   : > { %787 = vmatpush3.bf16.msk.msra.mxu1 %vm1249_vm0, %v1066_v14  ;;  %vm1265_vm11 = vmpackc.low %vm316_vm9, %vm315_vm8 }
  0x69   : > { %788 = vmatprep.subr.bf16.mxu1 %v1064_v3 }
  0x6a   : > { %777 = vmatpush3.bf16.msk.msra.mxu0 %vm715_vm4, %v1066_v14 }
  0x6b   : > { %778 = vmatprep.subr.bf16.mxu0 %v1064_v3 }
  0x6c   : > { %789 = vmatpush3.bf16.msk.msra.mxu1 %vm1257_vm7, %v1066_v14 }
  0x6d   : > { %790 = vmatprep.subr.bf16.mxu1 %v1064_v3 }
  0x6e   : > { %779 = vmatpush3.bf16.msk.msra.mxu0 %vm717_vm10, %v1066_v14 }
  0x6f   : > { %796 = vmatprep.subr.bf16.mxu0 %v1064_v3 }
  0x70   : > { %791 = vmatpush3.bf16.msk.msra.mxu1 %vm1265_vm11, %v1066_v14 }
  0x71   : > { %781 = vmatmul.mubr.msk.bf16.vlgmr.msra.gmra.mrb[0].mxu0 %vm344_vm12, %v894_v21  ;;  %808 = vmatprep.subr.bf16.mxu1 %v1064_v3 }
  0x72   : > { %804 = vmatprep.mubr.msk.bf16.mxu0 %vm1065_vm2, %v1064_v3 }
  0x73   : > { %793 = vmatmul.mubr.msk.bf16.vlgmr.msra.gmra.mrb[0].mxu1 %vm344_vm12, %v895_v22 }
  0x74   : > { %816 = vmatprep.mubr.msk.bf16.mxu1 %vm1065_vm2, %v1064_v3  ;;  %vm454_vm2 = vcmp.lt.s32.totalorder %v1235_v6, 64 }
  0x75   : > { %v455_v34 = vsel %vm454_vm2, 1, %v1067_v23 }
  0x76   : > { %v459_v39 = vrot.slane %v455_v34, %v1237_v8 }
  0x77   : > { %797 = vmatpush3.bf16.xpose.msk.msra.mxu0 %vm1241_vm13, %v1066_v14 }
  0x78   : > { %798 = vmatprep.subr.bf16.mxu0 %v1064_v3  ;;  %vm460_vm14 = vcmp.eq.s32.totalorder %v459_v39, 1 }
  0x79   : > { %809 = vmatpush3.bf16.xpose.msk.msra.mxu1 %vm1241_vm13, %v1066_v14 }
  0x7a   : > { %810 = vmatprep.subr.bf16.mxu1 %v1064_v3 }
  0x7f   : > { %799 = vmatpush3.bf16.xpose.msk.msra.mxu0 %vm1249_vm0, %v1066_v14 }
  0x80   : > { %800 = vmatprep.subr.bf16.mxu0 %v1064_v3 }
  0x81   : > { %811 = vmatpush3.bf16.xpose.msk.msra.mxu1 %vm1249_vm0, %v1066_v14  ;;  %vm588_vm0 = vcmask 0  }
  0x82   : > { %812 = vmatprep.subr.bf16.mxu1 %v1064_v3 }
  0x87   : > { %801 = vmatpush3.bf16.xpose.msk.msra.mxu0 %vm1257_vm7, %v1066_v14 }
  0x88   : > { %802 = vmatprep.subr.bf16.mxu0 %v1064_v3 }
  0x89   : > { %813 = vmatpush3.bf16.xpose.msk.msra.mxu1 %vm1257_vm7, %v1066_v14 }
  0x8a   : > { %814 = vmatprep.subr.bf16.mxu1 %v1064_v3 }
  0x8f   : > { %803 = vmatpush3.bf16.xpose.msk.msra.mxu0 %vm1265_vm11, %v1066_v14 }
  0x91   : > { %815 = vmatpush3.bf16.xpose.msk.msra.mxu1 %vm1265_vm11, %v1066_v14 }
 0x144   : > { %v382_v24 = vpop.f32.mrb[0].mxu0 }
 0x145   : > { %v441_v25 = vrot.slane %v382_v24, 4  ;;  %v782_v26 = vpop.f32.mrb[1].mxu0 }
 0x146   : > { %v385_v27 = vpop.f32.mrb[2].mxu0  ;;  %v433_v28 = vpop.f32.mrb[0].mxu1 }
 0x147   : > { %v443_v29 = vadd.f32 %v441_v25, %v382_v24  ;;  %v446_v30 = vrot.slane %v433_v28, 4  ;;  %v783_v31 = vpop.f32.mrb[3].mxu0  ;;  %v794_v32 = vpop.f32.mrb[1].mxu1 }
 0x148   : > { %v436_v33 = vpop.f32.mrb[2].mxu1 }
 0x149   : > { %v444_v35 = vadd.f32 %v443_v29, %v385_v27  ;;  %v448_v36 = vadd.f32 %v446_v30, %v433_v28  ;;  %v795_v37 = vpop.f32.mrb[3].mxu1 }
 0x14b   : > { %v449_v38 = vadd.f32 %v448_v36, %v436_v33 }
 0x14d   : > { %v450_v40 = vadd.f32 %v449_v38, %v444_v35 }
 0x14f   : > { %vm451_vm13 = vcmp.ge.f32.partialorder %v450_v40, 0.0  ;;  %v452_v41 = vmul.f32 0.2, %v450_v40 }
 0x151   : > { %v453_v42 = vsel %vm451_vm13, %v450_v40, %v452_v41 }
 0x152   : > { %v461_v43 = vsel %vm460_vm14, %v453_v42, -1e+30 }
 0x153   : > { %v463_v44 = vsel %vm462_vm15, %v461_v43, -inf }
 0x154   : > { %464 = vmax.xlane.f32.xlu0 %v463_v44 }
 0x1e1   : > { %v465_v45 = vpop.xlane.xlu0 %464 }
 0x1e2   : > { %v466_v46 = vsel %vm462_vm15, %v465_v45, -inf }
 0x1e3   : > { %v467_v47 = vrot.slane %v466_v46, 4 }
 0x1e5   : > { %v468_v48 = vmax.f32 %v466_v46, %v467_v47 }
 0x1e7   : > { %v469_v49 = vrot.slane %v468_v48, 2 }
 0x1e9   : > { %v470_v50 = vmax.f32 %v468_v48, %v469_v49 }
 0x1eb   : > { %v471_v51 = vrot.slane %v470_v50, 1 }
 0x1ed   : > { %v472_v53 = vmax.f32 %v470_v50, %v471_v51 }
 0x1ef   : > { %v474_v54 = vmax.f32 %v473_v52, %v472_v53 }
 0x1f1   : > { %v475_v55 = vsub.f32 %v473_v52, %v474_v54  ;;  %v482_v56 = vrot.slane %v474_v54, %v1237_v8  ;;  %589 = vst.msk [vmem:[#allocation7] sm:$0x1] %vm588_vm0, %v474_v54 }
 0x1f3   : > { %v476_v57 = vmul.f32 1.442695, %v475_v55  ;;  %484 = vperm.xlu0 %892, %v482_v56  }
 0x1f5   : > { %896 = vpow2.f32 %v476_v57 }
 0x1ff   : > { %v897_v58 = vpop.eup %896 }
 0x200   : > { %v579_v59 = vrot.slane %v897_v58, %v1237_v8 }
 0x202   : > { %581 = vperm.xlu1 %893, %v579_v59  }
 0x272   : > { %v485_v60 = vpop.permute.xlu0 %484 }
 0x273   : > { %v487_v61 = vsub.f32 %v461_v43, %v485_v60 }
 0x275   : > { %v488_v62 = vmul.f32 1.442695, %v487_v61 }
 0x277   : > { %898 = vpow2.f32 %v488_v62 }
 0x281   : > { %v899_v63 = vpop.eup %898 }
 0x282   : > { %v490_v0 = vpack.c.bf16 %v899_v63, %v899_v63 }
 0x284   : > { %v491_v1 = vunpack.c.l.bf16 %v490_v0  ;;  %817 = vmatmul.mubr.bf16.vlgmr.msra.gmra.mrb[4].mxu1 %v490_v0 }
 0x286   : > { %v492_v2 = vsub.f32 %v899_v63, %v491_v1 }
 0x288   : > { %v493_v3 = vpack.c.bf16 %v492_v2, %v492_v2 }
 0x28a   : > { %805 = vmatmul.mubr.bf16.vlgmr.msra.gmra.mrb[4].mxu0 %v493_v3 }
 0x28b   : > { %971 = shalt.err (!%p968_p2)
}
 0x28c   : > { %s972_s14 = scalar_lea.hbm %s1368_s4, 16 }
 0x28d   : > { %p973_p13 = scmp.ne.s32.totalorder %s1368_s4, %s972_s14  ;;  %p978_p7 = scmp.lt.u32.totalorder %s972_s14, %s1368_s4 }
 0x28f   : > { %p974_p11 = pnand %p973_p13, %p845_p10 }
 0x291   : > { %p975_p3 = pneg %p974_p11 }
 0x293   : > { %p980_p6 = pnand %p978_p7, %p975_p3 }
 0x295   : > { %983 = shalt.err (!%p980_p6)
}
 0x296   : > { %827 = dma.vmem_to_hbm [thread:$0]  (%p845_p10), %s598_s27, 16, %s1368_s4, [#allocation4]   ;;  %v574_v8 = vld [vmem:[#allocation8] sm:$0xf]  ;;  %v582_v9 = vpop.permute.xlu1 %581  ;;  %vm586_vm1 = vcmask 519168  }
 0x297   : > { %s1069_s9 = smov [#allocation8]   ;;  %v584_v11 = vmul.f32 %v582_v9, %v574_v8 }
 0x298   : > { %s608_s24 = sshll.u32 %s1069_s9, 4  ;;  %s609_s24 = int_to_ptr.vmem [resolvable:$true] %s608_s24 }
 0x299   : > { %s984_s8 = scalar_lea.vmem %s609_s24, 64  ;;  %p991_p5 = scmp.lt.s32.totalorder %s609_s24, %s609_s24 }
 0x29a   : > { %p985_p9 = scmp.ne.s32.totalorder %s609_s24, %s984_s8  ;;  %p992_p8 = scmp.lt.s32.totalorder %s984_s8, %s984_s8 }
 0x29c   : > { %p986_p1 = pnand %p985_p9, %p845_p10  ;;  %p993_p12 = por %p992_p8, %p991_p5 }
 0x29e   : > { %p987_p4 = pneg %p986_p1 }
 0x2a0   : > { %p994_p0 = pnand %p993_p12, %p987_p4 }
 0x357   : > { %v568_v4 = vpop.f32.mrb[4].mxu1 }
 0x358   : > { %v818_v5 = vpop.f32.mrb[5].mxu1 }
 0x359   : > { %v571_v6 = vpop.f32.mrb[6].mxu1 }
 0x35a   : > { %v819_v7 = vpop.f32.mrb[7].mxu1 }
 0x35d   : > { %v528_v10 = vpop.f32.mrb[4].mxu0 }
 0x35e   : > { %v569_v12 = vadd.f32 %v568_v4, %v528_v10  ;;  %v806_v13 = vpop.f32.mrb[5].mxu0 }
 0x35f   : > { %v531_v14 = vpop.f32.mrb[6].mxu0 }
 0x360   : > { %v585_v15 = vadd.f32 %v584_v11, %v569_v12  ;;  %v807_v16 = vpop.f32.mrb[7].mxu0 }
 0x362   : > { %587 = vst.msk [vmem:[#allocation8] sm:$0xf] %vm586_vm1, %v585_v15 }
 0x363   : > { %997 = shalt.err (!%p994_p0)
}
 0x364   : > { %s998_s23 = scalar_lea.hbm %s1369_s5, 64 }
 0x365   : > { %p999_p2 = scmp.ne.s32.totalorder %s1369_s5, %s998_s23  ;;  %p1004_p3 = scmp.lt.u32.totalorder %s998_s23, %s1369_s5 }
 0x367   : > { %p1000_p13 = pnand %p999_p2, %p845_p10 }
 0x369   : > { %p1001_p11 = pneg %p1000_p13 }
 0x36b   : > { %p1006_p7 = pnand %p1004_p3, %p1001_p11 }
 0x36d   : > { %1009 = shalt.err (!%p1006_p7)
}
 0x36e   : > { %829 = dma.vmem_to_hbm [thread:$0]  (%p845_p10), %s609_s24, 64, %s1369_s5, [#allocation9]  }
 0x36f   : > { %1035 = dma.done.wait (%p845_p10), [#allocation4], 16  }
 0x370   : > { %1037 = vsyncadd (%p845_p10), [#allocation4], 4294967280 }
 0x371   : > { %1039 = dma.done.wait (%p845_p10), [#allocation9], 64  }
 0x372   : > { %1041 = vsyncadd (%p845_p10), [#allocation9], 4294967232 }
 0x373 PF: > { %s1390_s13 = smov %s1171_s18  ;;  %p19_p6 = scmp.ge.s32.totalorder %s1145_s28, 5  }
 0x374   : > { %s1391_s18 = smov %s1048_s19  ;;  %s1392_s19 = smov %s1052_s20 }
 0x375   : > { %s1393_s20 = smov %s1390_s13  ;;  %s1394_s21 = smov %s1145_s28 }
 0x376   :  { %21 = sbr.rel (!%p19_p6) target bundleno = 6 (0x6), region = 92 }
 0x37d   :  { %625 = vsyncpa [#allocation3], 1 }
 0x37e   :  { %627 = vsyncpa [#allocation3 + $0x1], 1 }
 0x37f   :  { %628 = vsyncpa [#allocation6], 1 }
 0x380   :  { %629 = vsyncpa [#allocation4], 1 }
 0x381   :  { %631 = vsyncpa [#allocation4 + $0x1], 1 }
 0x382   :  { %632 = vsyncpa [#allocation9], 1 }

</bundles_post_ra>
